<compile_context>
chip_gen: v7x
topology: tpu7x:2x2x1
jax: 0.10.0
libtpu: 0.0.40
codegen_flags: <defaults>
</compile_context>

<pallas_src>
import functools

import jax
import jax.numpy as jnp
from jax import lax
from jax.experimental import pallas as pl
from jax.experimental.pallas import tpu as pltpu


_CPARAMS = pltpu.CompilerParams(
    dimension_semantics=("parallel",),     # column-tile axis: pipelined, TC-shardable on v7x
    vmem_limit_bytes=32 * 1024 * 1024,     # explicit, safe on v5e/v6e/v7x (64 MiB/TC)
)


def _round_up(x, m):
    return ((x + m - 1) // m) * m


def _pick_col_tile(cols, max_tile):
    """Lane-dense column tiling: tile is a multiple of 128, >=2 grid steps when possible."""
    cp = _round_up(cols, 128)
    tile = min(max_tile, cp)
    if tile == cp and cp >= 256:
        tile = _round_up(cp // 2, 128)     # ensure >=2 grid steps (v7x dual-TC sharding)
    cp = _round_up(cp, tile)
    return tile, cp


def _pad_cols(x, cp):
    pad = cp - x.shape[-1]
    if pad == 0:
        return x
    cfg = [(0, 0)] * (x.ndim - 1) + [(0, pad)]
    return jnp.pad(x, cfg)


# ----------------------------------------------------------------------------
# Pallas kernels (channels-first: (C, points) tiles, point axis on lanes)
# ----------------------------------------------------------------------------
def _fused_linear_kernel(*refs, n_in, relu):
    # refs = x_0..x_{n-1} (Ci, T), w_0..w_{n-1} (Cout, Ci), b (Cout, 1), out (Cout, T)
    b_ref = refs[2 * n_in]
    o_ref = refs[2 * n_in + 1]
    acc = None
    for k in range(n_in):
        d = jnp.dot(refs[n_in + k][...].astype(jnp.bfloat16),
                    refs[k][...].astype(jnp.bfloat16),
                    preferred_element_type=jnp.float32)
        acc = d if acc is None else acc + d
    acc = acc + b_ref[...]
    if relu:
        acc = jnp.maximum(acc, 0.0)
    o_ref[...] = acc


def _attn_stage_kernel(dxyz_ref, ofea_ref, cfea_ref, wx_ref, wf_ref, bw_ref,
                       wdel_ref, bdel_ref, cmax_ref, gsum_ref, *, nsample, c_d):
    # Fused stage (stages 1 & 2), channels-first.  Per neighbor s:
    #   diff_s   = o_fea_s - center
    #   logits_s = Wx @ d_xyz_s + Wf @ diff_s        (bias dropped: softmax shift-invariant)
    #   d_m_s    = relu(W_delta @ d_xyz_s + b_delta)
    # outputs:
    #   cmax = max_s logits_s + b_w                  (== F.max_pool2d of w-MLP)
    #   gsum = sum_s softmax_s(logits_s) * [d_m_s ; o_fea_s]
    cf = cfea_ref[...]                                 # (C, T) f32
    wx = wx_ref[...].astype(jnp.bfloat16)              # (c_w, 3)
    wf = wf_ref[...].astype(jnp.bfloat16)              # (c_w, C)
    wdel = wdel_ref[...].astype(jnp.bfloat16)          # (c_d, 3)
    bdel = bdel_ref[...]                               # (c_d, 1)

    logits, vals = [], []
    for s in range(nsample):                           # nsample is small & static
        dx = dxyz_ref[s]                               # (3, T) bf16
        of32 = ofea_ref[s].astype(jnp.float32)         # (C, T) f32 (VALU math in f32)
        df = (of32 - cf).astype(jnp.bfloat16)          # bf16 only feeds the MXU
        l = (jnp.dot(wx, dx, preferred_element_type=jnp.float32)
             + jnp.dot(wf, df, preferred_element_type=jnp.float32))
        dm = jnp.maximum(
            jnp.dot(wdel, dx, preferred_element_type=jnp.float32) + bdel, 0.0)
        logits.append(l)
        vals.append(jnp.concatenate([dm, of32], axis=0))   # (c_d + C, T) == (c_w, T)

    m = functools.reduce(jnp.maximum, logits)
    cmax_ref[...] = m + bw_ref[...]                    # bias added once (shift-invariance)

    es = [jnp.exp(l - m) for l in logits]
    den = functools.reduce(jnp.add, es)
    num = functools.reduce(jnp.add, [e * v for e, v in zip(es, vals)])
    gsum_ref[...] = num * pl.reciprocal(den, approx=True)


def _attn3_kernel(dfea_ref, cfea_ref, w_ref, o_ref, *, nsp):
    # Stage-3 cross attention.  NOTE: as in the PyTorch reference, the value tensor
    # (c_fea2) is constant along the softmax axis, so g_fea3 == c_fea2 up to softmax
    # rounding; kept faithful (exact per-term division, bias dropped by shift-invariance).
    w = w_ref[...].astype(jnp.bfloat16)
    logits = [jnp.dot(w, dfea_ref[s], preferred_element_type=jnp.float32)
              for s in range(nsp)]
    m = functools.reduce(jnp.maximum, logits)
    es = [jnp.exp(l - m) for l in logits]
    den = functools.reduce(jnp.add, es)
    psum = functools.reduce(jnp.add, [e / den for e in es])   # == 1 up to rounding
    o_ref[...] = cfea_ref[...] * psum


def _maxpool_kernel(x_ref, o_ref, *, nsample):
    # x: (S, C, T) -> o: (C, T)   (max over the neighbor axis, lane-dense output)
    o_ref[...] = functools.reduce(jnp.maximum, [x_ref[s] for s in range(nsample)])


def _mlp_maxpool_kernel(dxyz_ref, ofea_ref, cfea_ref, wx_ref, wf_ref, b_ref, o_ref,
                        *, nsample):
    # Stage 4: relu(W @ [o_fea - center ; d_xyz] + b) max-pooled over neighbors.
    # bias + relu hoisted out of the neighbor loop (max is monotone, bias is constant).
    cf = cfea_ref[...]
    wx = wx_ref[...].astype(jnp.bfloat16)
    wf = wf_ref[...].astype(jnp.bfloat16)
    zs = []
    for s in range(nsample):
        dx = dxyz_ref[s]
        df = (ofea_ref[s].astype(jnp.float32) - cf).astype(jnp.bfloat16)
        zs.append(jnp.dot(wf, df, preferred_element_type=jnp.float32)
                  + jnp.dot(wx, dx, preferred_element_type=jnp.float32))
    o_ref[...] = jnp.maximum(functools.reduce(jnp.maximum, zs) + b_ref[...], 0.0)


# ----------------------------------------------------------------------------
# Pallas wrappers (column-tiled grids, channels-first, lane-dense outputs)
# ----------------------------------------------------------------------------
def pallas_fused_linear(xs, ws, b, relu=True, max_tile=4096):
    # xs: list of (Ci, R); ws: list of (Cout, Ci); b: (Cout,)  ->  (Cout, R)
    n = len(xs)
    R = xs[0].shape[1]
    Cout = ws[0].shape[0]
    tile, cp = _pick_col_tile(R, max_tile)
    xs = [_pad_cols(x, cp) for x in xs]
    col2 = lambda i: (0, i)
    rep = lambda i: (0, 0)
    in_specs = ([pl.BlockSpec((x.shape[0], tile), col2) for x in xs]
                + [pl.BlockSpec(w.shape, rep) for w in ws]
                + [pl.BlockSpec((Cout, 1), rep)])
    out = pl.pallas_call(
        functools.partial(_fused_linear_kernel, n_in=n, relu=relu),
        out_shape=jax.ShapeDtypeStruct((Cout, cp), jnp.float32),
        grid=(cp // tile,),
        in_specs=in_specs,
        out_specs=pl.BlockSpec((Cout, tile), col2),
        compiler_params=_CPARAMS,
    )(*xs, *ws, b.reshape(Cout, 1))
    return out[:, :R]


def pallas_attn_stage(d_xyz, o_fea, c_fea, wx, wf, bw, wdel, bdel, c_d, max_tile=2048):
    # d_xyz (S,3,R) bf16, o_fea (S,C,R) bf16, c_fea (C,R) f32
    # wx (c_w,3), wf (c_w,C), bw (c_w,), wdel (c_d,3), bdel (c_d,)
    S, _, R = d_xyz.shape
    C = o_fea.shape[1]
    c_w = wx.shape[0]
    assert c_w == c_d + C
    tile, cp = _pick_col_tile(R, max_tile)
    d_xyz = _pad_cols(d_xyz, cp)
    o_fea = _pad_cols(o_fea, cp)
    c_fea = _pad_cols(c_fea, cp)
    col3 = lambda i: (0, 0, i)
    col2 = lambda i: (0, i)
    rep = lambda i: (0, 0)
    cmax, gsum = pl.pallas_call(
        functools.partial(_attn_stage_kernel, nsample=S, c_d=c_d),
        out_shape=(jax.ShapeDtypeStruct((c_w, cp), jnp.float32),
                   jax.ShapeDtypeStruct((c_w, cp), jnp.float32)),
        grid=(cp // tile,),
        in_specs=[
            pl.BlockSpec((S, 3, tile), col3),
            pl.BlockSpec((S, C, tile), col3),
            pl.BlockSpec((C, tile), col2),
            pl.BlockSpec((c_w, 3), rep),
            pl.BlockSpec((c_w, C), rep),
            pl.BlockSpec((c_w, 1), rep),
            pl.BlockSpec((c_d, 3), rep),
            pl.BlockSpec((c_d, 1), rep),
        ],
        out_specs=(pl.BlockSpec((c_w, tile), col2),
                   pl.BlockSpec((c_w, tile), col2)),
        compiler_params=_CPARAMS,
    )(d_xyz, o_fea, c_fea, wx, wf, bw.reshape(c_w, 1), wdel, bdel.reshape(c_d, 1))
    return cmax[:, :R], gsum[:, :R]


def pallas_attn3(d_fea, c_fea, w, max_tile=2048):
    # d_fea (SP, C, R) bf16, c_fea (C, R) f32, w (C, C) -> (C, R)
    SP, C, R = d_fea.shape
    tile, cp = _pick_col_tile(R, max_tile)
    d_fea = _pad_cols(d_fea, cp)
    c_fea = _pad_cols(c_fea, cp)
    out = pl.pallas_call(
        functools.partial(_attn3_kernel, nsp=SP),
        out_shape=jax.ShapeDtypeStruct((C, cp), jnp.float32),
        grid=(cp // tile,),
        in_specs=[pl.BlockSpec((SP, C, tile), lambda i: (0, 0, i)),
                  pl.BlockSpec((C, tile), lambda i: (0, i)),
                  pl.BlockSpec((C, C), lambda i: (0, 0))],
        out_specs=pl.BlockSpec((C, tile), lambda i: (0, i)),
        compiler_params=_CPARAMS,
    )(d_fea, c_fea, w)
    return out[:, :R]


def pallas_group_maxpool(x, max_tile=4096):
    # x: (S, C, R) f32 -> (C, R)
    S, C, R = x.shape
    tile, cp = _pick_col_tile(R, max_tile)
    x = _pad_cols(x, cp)
    out = pl.pallas_call(
        functools.partial(_maxpool_kernel, nsample=S),
        out_shape=jax.ShapeDtypeStruct((C, cp), jnp.float32),
        grid=(cp // tile,),
        in_specs=[pl.BlockSpec((S, C, tile), lambda i: (0, 0, i))],
        out_specs=pl.BlockSpec((C, tile), lambda i: (0, i)),
        compiler_params=_CPARAMS,
    )(x)
    return out[:, :R]


def pallas_mlp_maxpool(d_xyz, o_fea, c_fea, wx, wf, b, max_tile=2048):
    # d_xyz (S,3,R) bf16, o_fea (S,C,R) bf16, c_fea (C,R) f32 -> (Cout, R)
    S, _, R = d_xyz.shape
    C = o_fea.shape[1]
    Cout = wx.shape[0]
    tile, cp = _pick_col_tile(R, max_tile)
    d_xyz = _pad_cols(d_xyz, cp)
    o_fea = _pad_cols(o_fea, cp)
    c_fea = _pad_cols(c_fea, cp)
    out = pl.pallas_call(
        functools.partial(_mlp_maxpool_kernel, nsample=S),
        out_shape=jax.ShapeDtypeStruct((Cout, cp), jnp.float32),
        grid=(cp // tile,),
        in_specs=[pl.BlockSpec((S, 3, tile), lambda i: (0, 0, i)),
                  pl.BlockSpec((S, C, tile), lambda i: (0, 0, i)),
                  pl.BlockSpec((C, tile), lambda i: (0, i)),
                  pl.BlockSpec((Cout, 3), lambda i: (0, 0)),
                  pl.BlockSpec((Cout, C), lambda i: (0, 0)),
                  pl.BlockSpec((Cout, 1), lambda i: (0, 0))],
        out_specs=pl.BlockSpec((Cout, tile), lambda i: (0, i)),
        compiler_params=_CPARAMS,
    )(d_xyz, o_fea, c_fea, wx, wf, b.reshape(Cout, 1))
    return out[:, :R]


# ----------------------------------------------------------------------------
# Plain-JAX glue: FPS, kNN, gather/group (data-dependent index ops)
# ----------------------------------------------------------------------------
def farthest_point_sampling(xyz, npoint):
    # xyz: (B, N, 3) -> (B, npoint) int32.  Deterministic: start from point 0.
    B, N, _ = xyz.shape

    def body(i, state):
        idx, dists, farthest = state
        idx = idx.at[:, i].set(farthest)
        centroid = xyz[jnp.arange(B), farthest]                   # (B, 3)
        d = jnp.sum((xyz - centroid[:, None, :]) ** 2, axis=-1)   # (B, N)
        dists = jnp.minimum(dists, d)
        farthest = jnp.argmax(dists, axis=-1).astype(jnp.int32)
        return idx, dists, farthest

    idx0 = jnp.zeros((B, npoint), jnp.int32)
    dists0 = jnp.full((B, N), 1e10, jnp.float32)
    far0 = jnp.zeros((B,), jnp.int32)
    idx, _, _ = lax.fori_loop(0, npoint, body, (idx0, dists0, far0))
    return idx


def knn_query(nsample, xyz_db, xyz_q, comp_db=None, comp_q=None):
    # TODO(synk): tile this (B,M,N) distance computation in Pallas for large N.
    d = jnp.sum((xyz_q[:, :, None, :] - xyz_db[:, None, :, :]) ** 2, axis=-1)
    if comp_db is not None and comp_q is not None:
        d = d + jnp.where(comp_q[:, :, None] == comp_db[:, None, :], 0.0, 1e6)
    _, idx = lax.top_k(-d, nsample)
    return idx.astype(jnp.int32)


def group_neighbors(src_cf, idx, points_per_batch, dtype=jnp.bfloat16):
    # src_cf (C, B*points_per_batch) channels-first; idx (B, M, S) -> (S, C, B*M).
    # Grouped activations are cast to bf16 on the wire (half the DMA bytes); the
    # kernels upcast for VALU math and feed bf16 only to the MXU.
    # TODO(synk): fuse this gather into the stage kernels via PrefetchScalarGridSpec
    # (idx in SMEM driving the DMA) to avoid materializing the grouped tensors in HBM.
    B, M, S = idx.shape
    flat = idx + (jnp.arange(B, dtype=jnp.int32) * points_per_batch)[:, None, None]
    flat = jnp.transpose(flat, (2, 0, 1)).reshape(S, B * M)
    out = jnp.take(src_cf, flat, axis=1)                 # (C, S, B*M)
    return jnp.transpose(out, (1, 0, 2)).astype(dtype)   # (S, C, B*M)


def group_diff_xyz(xyz_cf, center_cf, idx, points_per_batch):
    g = group_neighbors(xyz_cf, idx, points_per_batch, dtype=jnp.float32)
    return (g - center_cf[None]).astype(jnp.bfloat16)    # (S, 3, B*M) bf16


# ----------------------------------------------------------------------------
# Config + deterministic parameter init (channels-first weights: (Cout, Cin))
# ----------------------------------------------------------------------------
CFG = dict(
    C_IN=4, C1=8, D1=4, G1=12, D2=4, G2=16, P3C=16, OUT=32,
    NPOINT=8, NSAMPLE1=4, NSAMPLE2=4, SP_NUM=4, NS3=4, NS4=4,
)


def init_params(key):
    def lin(k, cin, cout):
        kw, kb = jax.random.split(k)
        return (jax.random.normal(kw, (cout, cin), jnp.float32) * 0.1,
                jax.random.normal(kb, (cout,), jnp.float32) * 0.01)

    ks = jax.random.split(key, 8)
    c = CFG
    return {
        "mlps_1d":         lin(ks[0], c["C_IN"], c["C1"]),
        "mlps_w":          lin(ks[1], 3 + c["C1"], c["D1"] + c["C1"]),   # cols [xyz|fea]
        "mlps_delta_xyz":  lin(ks[2], 3, c["D1"]),
        "mlps_w2":         lin(ks[3], c["G1"] + 3, c["D2"] + c["G1"]),   # cols [fea|xyz]
        "mlps_delta_xyz2": lin(ks[4], 3, c["D2"]),
        "mlps_w3":         lin(ks[5], c["G2"], c["G2"]),
        "mlps_sp_fea3":    lin(ks[6], c["G2"] + 3, c["P3C"]),            # cols [fea|xyz]
        "mlps_new":        lin(ks[7],
                               c["G2"] + c["P3C"] + c["G2"] + c["G2"]
                               + c["G1"] + c["G1"] + c["C1"], c["OUT"]),
    }


# ----------------------------------------------------------------------------
# Forward pass (single grouper, mirrors _PointNet2SAModuleBase.forward)
# ----------------------------------------------------------------------------
def pointnet2_sa_forward(xyz, features, comp, params):
    # xyz (B,N,3) f32, features (B,C_IN,N) f32, comp (B,N) int32
    c = CFG
    B, N, _ = xyz.shape
    P, SP = c["NPOINT"], c["SP_NUM"]
    BP = B * P

    # furthest sampling of centers
    cidx = farthest_point_sampling(xyz, P)                                    # (B,P)
    new_xyz = jnp.take_along_axis(xyz, cidx[..., None], axis=1)               # (B,P,3)
    new_comp = jnp.take_along_axis(comp, cidx, axis=1)                        # (B,P)
    xyz_cf = jnp.transpose(xyz, (2, 0, 1)).reshape(3, B * N)                  # (3,B*N)
    new_xyz_cf = jnp.transpose(new_xyz.reshape(BP, 3))                        # (3,BP)

    # mlps_1d on all points (single layout change to channels-first, then Pallas)
    feats_cf = jnp.transpose(features, (1, 0, 2)).reshape(c["C_IN"], B * N)   # (C_IN,B*N)
    W1d, b1d = params["mlps_1d"]
    feats_cf = pallas_fused_linear([feats_cf], [W1d], b1d, relu=True)         # (C1,B*N)
    fcidx = (cidx + jnp.arange(B, dtype=jnp.int32)[:, None] * N).reshape(BP)
    center_cf = jnp.take(feats_cf, fcidx, axis=1)                             # (C1,BP)

    # ---- stage 1: local kNN grouping + fused attention pooling ----
    idx1 = knn_query(c["NSAMPLE1"], xyz, new_xyz)
    o_fea1 = group_neighbors(feats_cf, idx1, N)                               # (S1,C1,BP) bf16
    d_xyz1 = group_diff_xyz(xyz_cf, new_xyz_cf, idx1, N)                      # (S1,3,BP) bf16
    Ww, bw = params["mlps_w"]
    Wd, bd = params["mlps_delta_xyz"]
    # TODO(synk): base class leaves the weight-MLPs unspecified; logits MLPs
    # (mlps_w/w2/w3) here have no trailing ReLU, delta/feature MLPs keep ReLU.
    c_fea1, g_fea1 = pallas_attn_stage(d_xyz1, o_fea1, center_cf,
                                       Ww[:, :3], Ww[:, 3:], bw, Wd, bd,
                                       c["D1"])                               # (G1,BP) x2

    # ---- stage 2: superpoint-aware kNN over sampled centers ----
    idx2 = knn_query(c["NSAMPLE2"], new_xyz, new_xyz, new_comp, new_comp)
    o_fea2 = group_neighbors(g_fea1, idx2, P)                                 # (S2,G1,BP)
    d_xyz2 = group_diff_xyz(new_xyz_cf, new_xyz_cf, idx2, P)
    Ww2, bw2 = params["mlps_w2"]
    Wd2, bd2 = params["mlps_delta_xyz2"]
    c_fea2, g_fea2 = pallas_attn_stage(d_xyz2, o_fea2, g_fea1,
                                       Ww2[:, c["G1"]:], Ww2[:, :c["G1"]], bw2,
                                       Wd2, bd2, c["D2"])                     # (G2,BP) x2

    # ---- stage 3: superpoint pooling + cross attention back to points ----
    # (faithful to the PyTorch reference: values are c_fea2 broadcast along the
    #  softmax axis, so g_fea3 == c_fea2 up to softmax rounding)
    sp_idx = farthest_point_sampling(new_xyz, SP)
    sp_xyz = jnp.take_along_axis(new_xyz, sp_idx[..., None], axis=1)          # (B,SP,3)
    sp_comp = jnp.take_along_axis(new_comp, sp_idx, axis=1)
    sp_localidx = knn_query(c["NS3"], new_xyz, sp_xyz, new_comp, sp_comp)     # (B,SP,NS3)
    sp_grouped = group_neighbors(c_fea2, sp_localidx, P, dtype=jnp.float32)   # (NS3,G2,B*SP)
    sp_fea = pallas_group_maxpool(sp_grouped)                                 # (G2,B*SP)
    sp_t = jnp.transpose(sp_fea.reshape(c["G2"], B, SP), (2, 0, 1))           # (SP,G2,B)
    d_fea3 = (sp_t[:, :, :, None] - c_fea2.reshape(c["G2"], B, P)[None]
              ).reshape(SP, c["G2"], BP).astype(jnp.bfloat16)                 # (SP,G2,BP)
    W3, _b3 = params["mlps_w3"]
    g_fea3 = pallas_attn3(d_fea3, c_fea2, W3)                                 # (G2,BP)

    # ---- stage 4: second superpoint-aware kNN on g_fea2, fused MLP + maxpool ----
    idx4 = knn_query(c["NS4"], new_xyz, new_xyz, new_comp, new_comp)
    o_fea4 = group_neighbors(g_fea2, idx4, P)                                 # (S4,G2,BP)
    d_xyz4 = group_diff_xyz(new_xyz_cf, new_xyz_cf, idx4, P)
    W4, b4 = params["mlps_sp_fea3"]
    local_point_fea = pallas_mlp_maxpool(d_xyz4, o_fea4, g_fea2,
                                         W4[:, c["G2"]:], W4[:, :c["G2"]], b4)  # (P3C,BP)

    # ---- final fusion MLP: concat + mlps_new fused into one kernel ----
    xs = [g_fea3, local_point_fea, g_fea2, c_fea2, g_fea1, c_fea1, center_cf]
    Wn, bn = params["mlps_new"]
    sizes = [x.shape[0] for x in xs]
    offs, w_splits, o = [], [], 0
    for s in sizes:
        w_splits.append(Wn[:, o:o + s])
        o += s
    new_feats_cf = pallas_fused_linear(xs, w_splits, bn, relu=True)           # (OUT,BP)
    new_features = jnp.transpose(new_feats_cf.reshape(c["OUT"], B, P), (1, 0, 2))

    return new_xyz, new_features, new_comp


# ----------------------------------------------------------------------------
# Pure-JAX f32 reference for the fused attention stage (used for self-check)
# ----------------------------------------------------------------------------
def _attn_stage_ref(d_xyz, o_fea, c_fea, wx, wf, bw, wdel, bdel):
    dx = d_xyz.astype(jnp.float32)
    of = o_fea.astype(jnp.float32)
    df = of - c_fea[None]
    logits = (jnp.einsum("oc,scr->sor", wx, dx)
              + jnp.einsum("oc,scr->sor", wf, df) + bw[None, :, None])
    cmax = logits.max(axis=0)
    wgt = jax.nn.softmax(logits, axis=0)
    dm = jnp.maximum(jnp.einsum("oc,scr->sor", wdel, dx) + bdel[None, :, None], 0.0)
    vals = jnp.concatenate([dm, of], axis=1)
    gsum = (wgt * vals).sum(axis=0)
    return cmax, gsum


# ----------------------------------------------------------------------------
if __name__ == "__main__":
    key = jax.random.PRNGKey(0)
    k_xyz, k_fea, k_comp, k_par = jax.random.split(key, 4)

    B, N = 2, 16
    xyz = jax.random.normal(k_xyz, (B, N, 3), jnp.float32)
    features = jax.random.normal(k_fea, (B, CFG["C_IN"], N), jnp.float32)
    comp = jax.random.randint(k_comp, (B, N), 0, 2).astype(jnp.int32)
    params = init_params(k_par)

    # correctness check 1: channels-first fused linear vs plain JAX (bf16 tol)
    x_chk = jax.random.normal(jax.random.PRNGKey(1), (CFG["C_IN"], B * N), jnp.float32)
    w_chk, b_chk = params["mlps_1d"]
    y_p = pallas_fused_linear([x_chk], [w_chk], b_chk, relu=True)
    y_r = jnp.maximum(w_chk @ x_chk + b_chk[:, None], 0.0)
    assert bool(jnp.allclose(y_p, y_r, rtol=2e-2, atol=2e-2))

    # correctness check 2: fused attention stage vs f32 JAX reference (loose tol:
    # bf16 MXU inputs + approx reciprocal in the softmax normalization)
    S1, R = CFG["NSAMPLE1"], B * CFG["NPOINT"]
    kk = jax.random.split(jax.random.PRNGKey(2), 3)
    dxyz_chk = jax.random.normal(kk[0], (S1, 3, R), jnp.float32).astype(jnp.bfloat16)
    ofea_chk = jax.random.normal(kk[1], (S1, CFG["C1"], R), jnp.float32).astype(jnp.bfloat16)
    cfea_chk = jax.random.normal(kk[2], (CFG["C1"], R), jnp.float32)
    Ww, bw = params["mlps_w"]
    Wd, bd = params["mlps_delta_xyz"]
    cm_p, gs_p = pallas_attn_stage(dxyz_chk, ofea_chk, cfea_chk,
                                   Ww[:, :3], Ww[:, 3:], bw, Wd, bd, CFG["D1"])
    cm_r, gs_r = _attn_stage_ref(dxyz_chk, ofea_chk, cfea_chk,
                                 Ww[:, :3], Ww[:, 3:], bw, Wd, bd)
    assert bool(jnp.allclose(cm_p, cm_r, rtol=5e-2, atol=5e-2))
    assert bool(jnp.allclose(gs_p, gs_r, rtol=5e-2, atol=5e-2))

    fwd = jax.jit(pointnet2_sa_forward)
    new_xyz, new_features, new_comp = fwd(xyz, features, comp, params)
    jax.block_until_ready((new_xyz, new_features, new_comp))

    assert new_xyz.shape == (B, CFG["NPOINT"], 3)
    assert new_features.shape == (B, CFG["OUT"], CFG["NPOINT"])
    assert new_comp.shape == (B, CFG["NPOINT"])
    assert bool(jnp.all(jnp.isfinite(new_features)))
    print("KERNEL_OK")
</pallas_src>

<mosaic_0001>
module attributes {stable_mosaic.version = 11 : i64} {
  func.func @_fused_linear_kernel(%arg0: i32, %arg1: memref<4x128xf32, #tpu.memory_space<vmem>>, %arg2: memref<8x4xf32, #tpu.memory_space<vmem>>, %arg3: memref<8x1xf32, #tpu.memory_space<vmem>>, %arg4: memref<8x128xf32, #tpu.memory_space<vmem>>) attributes {dimension_semantics = [#tpu.dimension_semantics<parallel>], iteration_bounds = array<i64: 1>, scalar_prefetch = 0 : i64, scratch_operands = 0 : i64, tpu.core_type = #tpu.core_type<tc>, window_params = [{transform_indices = @transform_0, window_bounds = array<i64: 4, 128>}, {pipeline_mode = #tpu.pipeline_mode<synchronous>, transform_indices = @transform_1, window_bounds = array<i64: 8, 4>}, {pipeline_mode = #tpu.pipeline_mode<synchronous>, transform_indices = @transform_2, window_bounds = array<i64: 8, 1>}, {transform_indices = @transform_3, window_bounds = array<i64: 8, 128>}]} {
    %c0 = arith.constant 0 : index
    %c0_0 = arith.constant 0 : index
    %0 = vector.load %arg2[%c0, %c0_0] : memref<8x4xf32, #tpu.memory_space<vmem>>, vector<8x4xf32>
    %1 = arith.truncf %0 : vector<8x4xf32> to vector<8x4xbf16>
    %c0_1 = arith.constant 0 : index
    %c0_2 = arith.constant 0 : index
    %2 = vector.load %arg1[%c0_1, %c0_2] : memref<4x128xf32, #tpu.memory_space<vmem>>, vector<4x128xf32>
    %3 = arith.truncf %2 : vector<4x128xf32> to vector<4x128xbf16>
    %cst = arith.constant dense<0.000000e+00> : vector<8x128xf32>
    %4 = tpu.matmul %1, %3, %cst {dimension_numbers = #tpu.dot_dimension_numbers<[1], [0], [0], [1], [0, 0, 1, 1], [], []>} : vector<8x4xbf16>, vector<4x128xbf16>, vector<8x128xf32> -> vector<8x128xf32>
    %c0_3 = arith.constant 0 : index
    %c0_4 = arith.constant 0 : index
    %5 = vector.load %arg3[%c0_3, %c0_4] : memref<8x1xf32, #tpu.memory_space<vmem>>, vector<8x1xf32>
    %6 = vector.broadcast %5 : vector<8x1xf32> to vector<8x128xf32>
    %7 = arith.addf %4, %6 : vector<8x128xf32>
    %cst_5 = arith.constant 0.000000e+00 : f32
    %8 = vector.broadcast %cst_5 : f32 to vector<8x128xf32>
    %9 = arith.maximumf %7, %8 : vector<8x128xf32>
    %c0_6 = arith.constant 0 : index
    %c0_7 = arith.constant 0 : index
    %10 = vector.load %arg4[%c0_6, %c0_7] : memref<8x128xf32, #tpu.memory_space<vmem>>, vector<8x128xf32>
    tpu.vector_store %arg4[%c0_6, %c0_7], %9 {strides = array<i32>} : memref<8x128xf32, #tpu.memory_space<vmem>>, vector<8x128xf32>,
    return
  }
  func.func @transform_0(%arg0: i32) -> (i32, i32) {
    %c0_i32 = arith.constant 0 : i32
    %c0_i32_0 = arith.constant 0 : i32
    return %c0_i32, %arg0 : i32, i32
  }
  func.func @transform_1(%arg0: i32) -> (i32, i32) {
    %c0_i32 = arith.constant 0 : i32
    %c0_i32_0 = arith.constant 0 : i32
    %c0_i32_1 = arith.constant 0 : i32
    return %c0_i32, %c0_i32_0 : i32, i32
  }
  func.func @transform_2(%arg0: i32) -> (i32, i32) {
    %c0_i32 = arith.constant 0 : i32
    %c0_i32_0 = arith.constant 0 : i32
    %c0_i32_1 = arith.constant 0 : i32
    return %c0_i32, %c0_i32_0 : i32, i32
  }
  func.func @transform_3(%arg0: i32) -> (i32, i32) {
    %c0_i32 = arith.constant 0 : i32
    %c0_i32_0 = arith.constant 0 : i32
    return %c0_i32, %arg0 : i32, i32
  }
}

</mosaic_0001>

<bundles_post_ra>
// kernel: tpu_custom_call.1
= control target key start
LH: loop header
LB: loop body
LE: loop exit
PB: predicated region body
PF: predicated region fallthrough
CT: control target
= control target key end

     0   :  { %vm30_vm0 = vcmask 1041408   ;;  %v128_v2 = vmov 0.0   ;;  %vm129_vm1 = vmmov 0   ;;  %s173_s0 = inlined_call_operand.vmem [shape: f32[4,128], index: 0, kind: input, shape index: {}]   ;;  %s174_s1 = inlined_call_operand.vmem [shape: f32[8,4], index: 1, kind: input, shape index: {}]   ;;  %s175_s2 = inlined_call_operand.vmem [shape: f32[8,1], index: 2, kind: input, shape index: {}]   ;;  %s176_s3 = inlined_call_operand.hbm [shape: f32[8,128], index: 3, kind: output, shape index: {}]  }
   0x1   :  { %v18_v0 = vld [vmem:[%s173_s0] sm:$0xf]  ;;  %93 = vmatprep.subr.bf16.mxu0 %v128_v2  ;;  %95 = vmatprep.mubr.msk.bf16.mxu0 %vm129_vm1, %v128_v2 }
   0x2   :  { %v16_v1 = vld [vmem:[%s174_s1] sm:$0xff]  ;;  %v19_v3 = vpack.c.bf16 %v18_v0, %v18_v0 }
   0x3   :  { %v20_v4 = vld [vmem:[%s175_s2] sm:$0xff] }
   0x4   :  { %8 = vsyncpa [#allocation3], 0  ;;  %v130_v5 = vmov 0   ;;  %v32_v6 = vsel %vm30_vm0, %v19_v3, 0  ;;  %v17_v7 = vpack.c.bf16 %v16_v1, %v16_v1  ;;  %vm26_vm2 = vcmask 31744   ;;  %s131_s0 = smov [#allocation2]  }
   0x5   :  { %103 = vset.pattern.permute.xlu0 %v130_v5  ;;  %94 = vmatpush3.bf16.msra.mxu0 %v32_v6  ;;  %s82_s1 = sshll.u32 %s131_s0, 4  ;;  %s83_s1 = int_to_ptr.vmem [resolvable:$true] %s82_s1 }
   0x6   :  { %23 = vperm.xlu0 %103, %v20_v4   ;;  %s104_s2 = scalar_lea.vmem %s83_s1, 128  ;;  %p109_p1 = scmp.lt.s32.totalorder %s83_s1, %s83_s1 }
   0x7   :  { %p105_p0 = scmp.ne.s32.totalorder %s83_s1, %s104_s2  ;;  %p110_p2 = scmp.lt.s32.totalorder %s104_s2, %s104_s2 }
   0x8   :  { %96 = vmatmul.mubr.msk.bf16.vlgmr.msra.gmra.mrb[0].mxu0 %vm26_vm2, %v17_v7 }
   0x9   :  { %p111_p3 = por %p110_p2, %p109_p1 }
   0xb   :  { %p112_p4 = pnand %p111_p3, %p105_p0 }
  0x85   :  { %v24_v8 = vpop.permute.xlu0 %23 }
  0xdb   :  { %v68_v9 = vpop.f32.mrb[0].mxu0 }
  0xdc   :  { %v69_v10 = vadd.f32 %v68_v9, %v24_v8  ;;  %v97_v11 = vpop.f32.mrb[1].mxu0 }
  0xdd   :  { %v71_v12 = vpop.f32.mrb[2].mxu0 }
  0xde   :  { %v74_v13 = vmax.f32 %v69_v10, 0.0  ;;  %v98_v14 = vpop.f32.mrb[3].mxu0 }
  0xe0   :  { %75 = vst [vmem:[#allocation2] sm:$0xff] %v74_v13 }
  0xe1   :  { %115 = shalt.err (!%p112_p4)
}
  0xe2   :  { %s116_s20 = scalar_lea.hbm %s176_s3, 128 }
  0xe3   :  { %p117_p5 = scmp.ne.s32.totalorder %s176_s3, %s116_s20  ;;  %p120_p6 = scmp.lt.u32.totalorder %s116_s20, %s176_s3 }
  0xe5   :  { %p122_p7 = pnand %p120_p6, %p117_p5 }
  0xe7   :  { %125 = shalt.err (!%p122_p7)
}
  0xe8   :  { %85 = dma.vmem_to_hbm [thread:$0]  %s83_s1, 128, %s176_s3, [#allocation3]  }
  0xe9   :  { %126 = dma.done.wait [#allocation3], 128  }
  0xea   :  { %127 = vsyncadd [#allocation3], 4294967168 }
  0xeb   :  { %89 = vsyncpa [#allocation3], 1 }

</bundles_post_ra>
